<compile_context>
chip_gen: v5e
topology: v5e:2x2
jax: 0.10.0
libtpu: 0.0.40
codegen_flags: <defaults>
</compile_context>

<pallas_src>
import functools
import math

import jax
import jax.numpy as jnp
from jax import lax
from jax.experimental import pallas as pl
from jax.experimental.pallas import tpu as pltpu

_LOG2E = 1.4426950408889634
_NEG_INF = -1e30  # large finite negative: no inf-inf NaNs in the online rescale


def _flash_attention_kernel(q_ref, k_ref, v_ref, o_ref,
                            m_ref, l_ref, acc_ref, qs_ref,
                            *, causal, scale, block_q, block_k, compute_dtype):
    # q_ref/o_ref: (block_q, D); k_ref/v_ref: (block_k, D)
    qi = pl.program_id(1)
    kv = pl.program_id(2)
    n_kv = pl.num_programs(2)

    @pl.when(kv == 0)
    def _init():
        m_ref[...] = jnp.full_like(m_ref, -jnp.inf)
        l_ref[...] = jnp.zeros_like(l_ref)
        acc_ref[...] = jnp.zeros_like(acc_ref)
        # q is block-resident across the kv axis: fold log2(e)/sqrt(D) into q and
        # cast to the MXU compute dtype ONCE per q tile (hoisted out of kv loop).
        qs_ref[...] = (q_ref[...].astype(jnp.float32)
                       * jnp.float32(scale)).astype(compute_dtype)

    def _accumulate(apply_mask):
        # Scores already in the exp2 domain (log2e folded into q); bf16 operands,
        # f32 MXU accumulation.
        s = lax.dot_general(qs_ref[...], k_ref[...], (((1,), (1,)), ((), ())),
                            preferred_element_type=jnp.float32)

        if apply_mask:  # only traced into the diagonal-intersecting branch
            row = qi * block_q + lax.broadcasted_iota(jnp.int32, s.shape, 0)
            col = kv * block_k + lax.broadcasted_iota(jnp.int32, s.shape, 1)
            s = jnp.where(col > row, jnp.float32(_NEG_INF), s)

        # Online softmax (base 2); stats in f32.
        m_prev = m_ref[...]
        m_new = jnp.maximum(m_prev, jnp.max(s, axis=-1, keepdims=True))
        alpha = jnp.exp2(m_prev - m_new)
        p = jnp.exp2(s - m_new)
        l_ref[...] = alpha * l_ref[...] + jnp.sum(p, axis=-1, keepdims=True)
        acc_ref[...] = alpha * acc_ref[...] + jnp.dot(
            p.astype(compute_dtype), v_ref[...],
            preferred_element_type=jnp.float32)
        m_ref[...] = m_new

    if causal:
        q_start = qi * block_q
        kv_start = kv * block_k
        # Tile has at least one valid (col <= row) element.
        has_work = kv_start < q_start + block_q
        # Tile intersects the strictly-upper-triangular (masked) region.
        needs_mask = kv_start + (block_k - 1) > q_start

        @pl.when(has_work & needs_mask)
        def _():
            _accumulate(apply_mask=True)

        @pl.when(has_work & jnp.logical_not(needs_mask))
        def _():
            _accumulate(apply_mask=False)
    else:
        _accumulate(apply_mask=False)

    @pl.when(kv == n_kv - 1)
    def _finalize():
        l = l_ref[...]
        r = pl.reciprocal(l, approx=True)   # EUP slot
        r = r * (2.0 - l * r)               # one Newton step -> ~f32 accuracy
        o_ref[...] = (acc_ref[...] * r).astype(o_ref.dtype)


def _pick_blocks(seq_len):
    # block_q large (arithmetic intensity ~ block_q flops per K/V byte);
    # block_k matched to MXU width to keep the (block_q, block_k) temporaries small.
    block_q = seq_len
    for t in (1024, 768, 512, 256, 128):
        if seq_len % t == 0:
            block_q = t
            break
    block_k = block_q
    for t in (256, 128):
        if seq_len % t == 0 and t <= block_q:
            block_k = t
            break
    return block_q, block_k


def pallas_attention(q, k, v, causal, *, block_q=None, block_k=None,
                     use_bf16_matmul=True):
    """q, k, v: [B, H, S, D]. `causal` is a compile-time Python bool."""
    B, H, S, D = q.shape
    BH = B * H
    out_dtype = q.dtype

    bq_def, bk_def = _pick_blocks(S)
    Tq = block_q if (block_q is not None and S % block_q == 0) else bq_def
    Tk = block_k if (block_k is not None and S % block_k == 0) else bk_def

    compute_dtype = (jnp.bfloat16
                     if (use_bf16_matmul and q.dtype == jnp.float32)
                     else q.dtype)

    qf = q.reshape(BH, S, D)
    # Cast the streamed K/V operands once: ~3x MXU throughput for f32 inputs and
    # half the K/V HBM bytes restreamed per q tile.
    kf = k.reshape(BH, S, D).astype(compute_dtype)
    vf = v.reshape(BH, S, D).astype(compute_dtype)

    n_q = S // Tq
    n_kv = S // Tk
    scale = _LOG2E / math.sqrt(D)   # softmax scale in the exp2 domain

    kernel = functools.partial(
        _flash_attention_kernel, causal=bool(causal), scale=scale,
        block_q=Tq, block_k=Tk, compute_dtype=compute_dtype)

    # Leading head dim squeezed out (kernel sees clean (T, D) refs).
    q_spec = pl.BlockSpec((None, Tq, D), lambda b, qi, kv: (b, qi, 0))

    if causal:
        # Clamp the kv block index for fully-masked tiles: unchanged block index
        # => Pallas issues no new K/V DMA for skipped steps (saves HBM traffic,
        # not just compute).
        def kv_index(b, qi, kv):
            last_needed = (qi * Tq + (Tq - 1)) // Tk
            return (b, jnp.minimum(kv, last_needed), 0)
    else:
        def kv_index(b, qi, kv):
            return (b, kv, 0)

    kv_spec = pl.BlockSpec((None, Tk, D), kv_index)
    o_spec = pl.BlockSpec((None, Tq, D), lambda b, qi, kv: (b, qi, 0))

    out = pl.pallas_call(
        kernel,
        out_shape=jax.ShapeDtypeStruct((BH, S, D), out_dtype),
        grid_spec=pltpu.PrefetchScalarGridSpec(
            num_scalar_prefetch=0,
            grid=(BH, n_q, n_kv),              # kv reduction axis innermost
            in_specs=[q_spec, kv_spec, kv_spec],
            out_specs=o_spec,
            scratch_shapes=[
                pltpu.VMEM((Tq, 1), jnp.float32),       # running max m (base 2)
                pltpu.VMEM((Tq, 1), jnp.float32),       # running denom l
                pltpu.VMEM((Tq, D), jnp.float32),       # output accumulator
                pltpu.VMEM((Tq, D), compute_dtype),     # pre-scaled / cast q tile
            ],
        ),
        compiler_params=pltpu.CompilerParams(
            # head and q-tile axes parallel; kv axis is the accumulator reduction.
            dimension_semantics=("parallel", "parallel", "arbitrary"),
            # Explicit scoped-VMEM budget (well within v5e/v6e/v7x limits even at
            # block_q=1024; raise and re-budget on v7x's 64 MiB if growing further).
            vmem_limit_bytes=32 * 1024 * 1024,
        ),
    )(qf, kf, vf)

    return out.reshape(B, H, S, D)


def _reference_attention(q, k, v, causal):
    d = q.shape[-1]
    s = jnp.einsum("bhqd,bhkd->bhqk",
                   q.astype(jnp.float32), k.astype(jnp.float32)) / (d ** 0.5)
    if causal:
        S = s.shape[-1]
        mask = jnp.triu(jnp.ones((S, S), dtype=bool), 1)
        s = jnp.where(mask, -jnp.inf, s)
    p = jax.nn.softmax(s, axis=-1)
    return jnp.einsum("bhqk,bhkd->bhqd", p, v.astype(jnp.float32)).astype(q.dtype)


if __name__ == "__main__":
    key = jax.random.PRNGKey(0)

    # Small shape consistent with the module (single-tile path).
    B, H, S, D = 2, 2, 8, 32
    kq, kk, kv_ = jax.random.split(key, 3)
    q = jax.random.normal(kq, (B, H, S, D), dtype=jnp.float32)
    k = jax.random.normal(kk, (B, H, S, D), dtype=jnp.float32)
    v = jax.random.normal(kv_, (B, H, S, D), dtype=jnp.float32)

    for causal in (False, True):
        y = jax.block_until_ready(pallas_attention(q, k, v, causal))
        y_ref = _reference_attention(q, k, v, causal)
        assert jnp.allclose(y, y_ref, atol=2e-2, rtol=2e-2), (
            f"mismatch (small) for causal={causal}")

    # Tiled check with block_q != block_k: exercises online softmax,
    # diagonal-only masking and the causal K/V-DMA skip (clamped kv index map).
    B2, H2, S2, D2 = 1, 2, 512, 64
    kq2, kk2, kv2 = jax.random.split(jax.random.PRNGKey(1), 3)
    q2 = jax.random.normal(kq2, (B2, H2, S2, D2), dtype=jnp.float32)
    k2 = jax.random.normal(kk2, (B2, H2, S2, D2), dtype=jnp.float32)
    v2 = jax.random.normal(kv2, (B2, H2, S2, D2), dtype=jnp.float32)

    for causal in (False, True):
        y2 = jax.block_until_ready(
            pallas_attention(q2, k2, v2, causal, block_q=256, block_k=128))
        y2_ref = _reference_attention(q2, k2, v2, causal)
        assert jnp.allclose(y2, y2_ref, atol=2e-2, rtol=2e-2), (
            f"mismatch (tiled) for causal={causal}")

    print("KERNEL_OK")
</pallas_src>

<mosaic_0001>
module attributes {stable_mosaic.version = 11 : i64} {
  func.func @_flash_attention_kernel(%arg0: i32, %arg1: i32, %arg2: i32, %arg3: memref<1x8x32xf32, #tpu.memory_space<vmem>>, %arg4: memref<1x8x32xbf16, #tpu.memory_space<vmem>>, %arg5: memref<1x8x32xbf16, #tpu.memory_space<vmem>>, %arg6: memref<1x8x32xf32, #tpu.memory_space<vmem>>, %arg7: memref<8x1xf32, #tpu.memory_space<vmem>>, %arg8: memref<8x1xf32, #tpu.memory_space<vmem>>, %arg9: memref<8x32xf32, #tpu.memory_space<vmem>>, %arg10: memref<8x32xbf16, #tpu.memory_space<vmem>>) attributes {dimension_semantics = [#tpu.dimension_semantics<parallel>, #tpu.dimension_semantics<parallel>, #tpu.dimension_semantics<arbitrary>], iteration_bounds = array<i64: 4, 1, 1>, scalar_prefetch = 0 : i64, scratch_operands = 4 : i64, tpu.core_type = #tpu.core_type<tc>, window_params = [{transform_indices = @transform_0, window_bounds = array<i64: 1, 8, 32>}, {transform_indices = @transform_1, window_bounds = array<i64: 1, 8, 32>}, {transform_indices = @transform_2, window_bounds = array<i64: 1, 8, 32>}, {transform_indices = @transform_3, window_bounds = array<i64: 1, 8, 32>}]} {
    %c0_i32 = arith.constant 0 : i32
    %0 = arith.cmpi eq, %arg2, %c0_i32 : i32
    %1 = arith.extui %0 : i1 to i32
    %c0_i32_0 = arith.constant 0 : i32
    %2 = arith.cmpi ne, %1, %c0_i32_0 : i32
    scf.if %2 {
      %cst_25 = arith.constant 0xFF800000 : f32
      %35 = vector.broadcast %cst_25 : f32 to vector<8x1xf32>
      %c0_26 = arith.constant 0 : index
      %c0_27 = arith.constant 0 : index
      %36 = vector.load %arg7[%c0_26, %c0_27] : memref<8x1xf32, #tpu.memory_space<vmem>>, vector<8x1xf32>
      tpu.vector_store %arg7[%c0_26, %c0_27], %35 {strides = array<i32>} : memref<8x1xf32, #tpu.memory_space<vmem>>, vector<8x1xf32>,
      %cst_28 = arith.constant 0.000000e+00 : f32
      %37 = vector.broadcast %cst_28 : f32 to vector<8x1xf32>
      %c0_29 = arith.constant 0 : index
      %c0_30 = arith.constant 0 : index
      %38 = vector.load %arg8[%c0_29, %c0_30] : memref<8x1xf32, #tpu.memory_space<vmem>>, vector<8x1xf32>
      tpu.vector_store %arg8[%c0_29, %c0_30], %37 {strides = array<i32>} : memref<8x1xf32, #tpu.memory_space<vmem>>, vector<8x1xf32>,
      %cst_31 = arith.constant 0.000000e+00 : f32
      %39 = vector.broadcast %cst_31 : f32 to vector<8x32xf32>
      %c0_32 = arith.constant 0 : index
      %c0_33 = arith.constant 0 : index
      %40 = vector.load %arg9[%c0_32, %c0_33] : memref<8x32xf32, #tpu.memory_space<vmem>>, vector<8x32xf32>
      tpu.vector_store %arg9[%c0_32, %c0_33], %39 {strides = array<i32>} : memref<8x32xf32, #tpu.memory_space<vmem>>, vector<8x32xf32>,
      %c0_34 = arith.constant 0 : index
      %c0_35 = arith.constant 0 : index
      %c0_36 = arith.constant 0 : index
      %41 = vector.load %arg3[%c0_34, %c0_35, %c0_36] : memref<1x8x32xf32, #tpu.memory_space<vmem>>, vector<1x8x32xf32>
      %42 = vector.shape_cast %41 : vector<1x8x32xf32> to vector<8x32xf32>
      %cst_37 = arith.constant 0.255034864 : f32
      %43 = vector.broadcast %cst_37 : f32 to vector<8x32xf32>
      %44 = arith.mulf %42, %43 : vector<8x32xf32>
      %45 = arith.truncf %44 : vector<8x32xf32> to vector<8x32xbf16>
      %c0_38 = arith.constant 0 : index
      %c0_39 = arith.constant 0 : index
      %46 = vector.load %arg10[%c0_38, %c0_39] : memref<8x32xbf16, #tpu.memory_space<vmem>>, vector<8x32xbf16>
      tpu.vector_store %arg10[%c0_38, %c0_39], %45 {strides = array<i32>} : memref<8x32xbf16, #tpu.memory_space<vmem>>, vector<8x32xbf16>,
    } else {
    }
    %c0 = arith.constant 0 : index
    %c0_1 = arith.constant 0 : index
    %3 = vector.load %arg10[%c0, %c0_1] : memref<8x32xbf16, #tpu.memory_space<vmem>>, vector<8x32xbf16>
    %c0_2 = arith.constant 0 : index
    %c0_3 = arith.constant 0 : index
    %c0_4 = arith.constant 0 : index
    %4 = vector.load %arg4[%c0_2, %c0_3, %c0_4] : memref<1x8x32xbf16, #tpu.memory_space<vmem>>, vector<1x8x32xbf16>
    %5 = vector.shape_cast %4 : vector<1x8x32xbf16> to vector<8x32xbf16>
    %cst = arith.constant dense<0.000000e+00> : vector<8x8xf32>
    %6 = tpu.matmul %3, %5, %cst {dimension_numbers = #tpu.dot_dimension_numbers<[1], [1], [0], [0], [0, 0, 1, 0], [], []>} : vector<8x32xbf16>, vector<8x32xbf16>, vector<8x8xf32> -> vector<8x8xf32>
    %c0_5 = arith.constant 0 : index
    %c0_6 = arith.constant 0 : index
    %7 = vector.load %arg7[%c0_5, %c0_6] : memref<8x1xf32, #tpu.memory_space<vmem>>, vector<8x1xf32>
    %cst_7 = arith.constant dense<0xFF800000> : vector<8xf32>
    %8 = vector.multi_reduction <maximumf>, %6, %cst_7 [1] : vector<8x8xf32> to vector<8xf32>
    %9 = vector.shape_cast %8 : vector<8xf32> to vector<8x1xf32>
    %10 = arith.maximumf %7, %9 : vector<8x1xf32>
    %11 = arith.subf %7, %10 : vector<8x1xf32>
    %12 = math.exp2 %11 : vector<8x1xf32>
    %13 = vector.broadcast %10 : vector<8x1xf32> to vector<8x8xf32>
    %14 = arith.subf %6, %13 : vector<8x8xf32>
    %15 = math.exp2 %14 : vector<8x8xf32>
    %c0_8 = arith.constant 0 : index
    %c0_9 = arith.constant 0 : index
    %16 = vector.load %arg8[%c0_8, %c0_9] : memref<8x1xf32, #tpu.memory_space<vmem>>, vector<8x1xf32>
    %17 = arith.mulf %12, %16 : vector<8x1xf32>
    %cst_10 = arith.constant dense<0.000000e+00> : vector<8xf32>
    %18 = vector.multi_reduction <add>, %15, %cst_10 [1] : vector<8x8xf32> to vector<8xf32>
    %19 = vector.shape_cast %18 : vector<8xf32> to vector<8x1xf32>
    %20 = arith.addf %17, %19 : vector<8x1xf32>
    %c0_11 = arith.constant 0 : index
    %c0_12 = arith.constant 0 : index
    %21 = vector.load %arg8[%c0_11, %c0_12] : memref<8x1xf32, #tpu.memory_space<vmem>>, vector<8x1xf32>
    tpu.vector_store %arg8[%c0_11, %c0_12], %20 {strides = array<i32>} : memref<8x1xf32, #tpu.memory_space<vmem>>, vector<8x1xf32>,
    %c0_13 = arith.constant 0 : index
    %c0_14 = arith.constant 0 : index
    %22 = vector.load %arg9[%c0_13, %c0_14] : memref<8x32xf32, #tpu.memory_space<vmem>>, vector<8x32xf32>
    %23 = vector.broadcast %12 : vector<8x1xf32> to vector<8x32xf32>
    %24 = arith.mulf %23, %22 : vector<8x32xf32>
    %25 = arith.truncf %15 : vector<8x8xf32> to vector<8x8xbf16>
    %c0_15 = arith.constant 0 : index
    %c0_16 = arith.constant 0 : index
    %c0_17 = arith.constant 0 : index
    %26 = vector.load %arg5[%c0_15, %c0_16, %c0_17] : memref<1x8x32xbf16, #tpu.memory_space<vmem>>, vector<1x8x32xbf16>
    %27 = vector.shape_cast %26 : vector<1x8x32xbf16> to vector<8x32xbf16>
    %cst_18 = arith.constant dense<0.000000e+00> : vector<8x32xf32>
    %28 = tpu.matmul %25, %27, %cst_18 {dimension_numbers = #tpu.dot_dimension_numbers<[1], [0], [0], [1], [0, 0, 1, 1], [], []>} : vector<8x8xbf16>, vector<8x32xbf16>, vector<8x32xf32> -> vector<8x32xf32>
    %29 = arith.addf %24, %28 : vector<8x32xf32>
    %c0_19 = arith.constant 0 : index
    %c0_20 = arith.constant 0 : index
    %30 = vector.load %arg9[%c0_19, %c0_20] : memref<8x32xf32, #tpu.memory_space<vmem>>, vector<8x32xf32>
    tpu.vector_store %arg9[%c0_19, %c0_20], %29 {strides = array<i32>} : memref<8x32xf32, #tpu.memory_space<vmem>>, vector<8x32xf32>,
    %c0_21 = arith.constant 0 : index
    %c0_22 = arith.constant 0 : index
    %31 = vector.load %arg7[%c0_21, %c0_22] : memref<8x1xf32, #tpu.memory_space<vmem>>, vector<8x1xf32>
    tpu.vector_store %arg7[%c0_21, %c0_22], %10 {strides = array<i32>} : memref<8x1xf32, #tpu.memory_space<vmem>>, vector<8x1xf32>,
    %c0_i32_23 = arith.constant 0 : i32
    %32 = arith.cmpi eq, %arg2, %c0_i32_23 : i32
    %33 = arith.extui %32 : i1 to i32
    %c0_i32_24 = arith.constant 0 : i32
    %34 = arith.cmpi ne, %33, %c0_i32_24 : i32
    scf.if %34 {
      %c0_25 = arith.constant 0 : index
      %c0_26 = arith.constant 0 : index
      %35 = vector.load %arg8[%c0_25, %c0_26] : memref<8x1xf32, #tpu.memory_space<vmem>>, vector<8x1xf32>
      %36 = tpu.reciprocal %35 {approx = true} : vector<8x1xf32> -> vector<8x1xf32>
      %37 = arith.mulf %35, %36 : vector<8x1xf32>
      %cst_27 = arith.constant 2.000000e+00 : f32
      %38 = vector.broadcast %cst_27 : f32 to vector<8x1xf32>
      %39 = arith.subf %38, %37 : vector<8x1xf32>
      %40 = arith.mulf %36, %39 : vector<8x1xf32>
      %c0_28 = arith.constant 0 : index
      %c0_29 = arith.constant 0 : index
      %41 = vector.load %arg9[%c0_28, %c0_29] : memref<8x32xf32, #tpu.memory_space<vmem>>, vector<8x32xf32>
      %42 = vector.broadcast %40 : vector<8x1xf32> to vector<8x32xf32>
      %43 = arith.mulf %41, %42 : vector<8x32xf32>
      %c0_30 = arith.constant 0 : index
      %c0_31 = arith.constant 0 : index
      %c0_32 = arith.constant 0 : index
      %44 = vector.load %arg6[%c0_30, %c0_31, %c0_32] : memref<1x8x32xf32, #tpu.memory_space<vmem>>, vector<1x8x32xf32>
      %45 = vector.shape_cast %44 : vector<1x8x32xf32> to vector<8x32xf32>
      %46 = vector.shape_cast %43 : vector<8x32xf32> to vector<1x8x32xf32>
      tpu.vector_store %arg6[%c0_30, %c0_31, %c0_32], %46 {strides = array<i32>} : memref<1x8x32xf32, #tpu.memory_space<vmem>>, vector<1x8x32xf32>,
    } else {
    }
    return
  }
  func.func @transform_0(%arg0: i32, %arg1: i32, %arg2: i32) -> (i32, i32, i32) {
    %c0_i32 = arith.constant 0 : i32
    %c0_i32_0 = arith.constant 0 : i32
    return %arg0, %arg1, %c0_i32 : i32, i32, i32
  }
  func.func @transform_1(%arg0: i32, %arg1: i32, %arg2: i32) -> (i32, i32, i32) {
    %c0_i32 = arith.constant 0 : i32
    %c0_i32_0 = arith.constant 0 : i32
    return %arg0, %arg2, %c0_i32 : i32, i32, i32
  }
  func.func @transform_2(%arg0: i32, %arg1: i32, %arg2: i32) -> (i32, i32, i32) {
    %c0_i32 = arith.constant 0 : i32
    %c0_i32_0 = arith.constant 0 : i32
    return %arg0, %arg2, %c0_i32 : i32, i32, i32
  }
  func.func @transform_3(%arg0: i32, %arg1: i32, %arg2: i32) -> (i32, i32, i32) {
    %c0_i32 = arith.constant 0 : i32
    %c0_i32_0 = arith.constant 0 : i32
    return %arg0, %arg1, %c0_i32 : i32, i32, i32
  }
}

</mosaic_0001>

<bundles_post_ra>
// kernel: tpu_custom_call.1
= control target key start
LH: loop header
LB: loop body
LE: loop exit
PB: predicated region body
PF: predicated region fallthrough
CT: control target
= control target key end

     0   :  { %s1024_s0 = inlined_call_operand.hbm [shape: f32[4,8,32], index: 0, kind: input, shape index: {}]   ;;  %s1025_s1 = inlined_call_operand.hbm [shape: bf16[4,8,32], index: 1, kind: input, shape index: {}]   ;;  %s1026_s2 = inlined_call_operand.hbm [shape: bf16[4,8,32], index: 2, kind: input, shape index: {}]   ;;  %s1027_s3 = inlined_call_operand.hbm [shape: f32[4,8,32], index: 3, kind: output, shape index: {}]  }
   0x1   :  { %1029 = sst [smem:[#allocation18_spill]] %s1025_s1 }
   0x2   :  { %8 = vsyncpa [#allocation7], 0 }
   0x3   :  { %10 = vsyncpa [#allocation7 + $0x1], 0 }
   0x4   :  { %11 = vsyncpa [#allocation10], 0 }
   0x5   :  { %13 = vsyncpa [#allocation10 + $0x1], 0 }
   0x6   :  { %14 = vsyncpa [#allocation8], 0 }
   0x7   :  { %16 = vsyncpa [#allocation8 + $0x1], 0  ;;  %s852_s12 = smov 0   ;;  %s854_s13 = smov 0  }
   0x8   :  { %s856_s14 = smov 0   ;;  %s858_s15 = smov 0  }
   0x9   :  { %s860_s16 = smov 0   ;;  %s862_s17 = smov 0  }
   0xa LB: > { %s883_s18 = sadd.s32 4294967295, %s827_s17   ;;  %s547_s19 = sadd.s32 4294967294, %s827_s17   ;;  %s827_s17 = sphi %s862_s17, %s22_s17   ;;  %s823_s16 = sphi %s860_s16, %s1045_s16   ;;  %s819_s15 = sphi %s858_s15, %s1044_s15   ;;  %s815_s14 = sphi %s856_s14, %s1043_s14   ;;  %s811_s13 = sphi %s854_s13, %s1042_s13   ;;  %s807_s12 = sphi %s852_s12, %s1041_s12  }
   0xb   : > { %s41_s20 = sadd.s32 1, %s823_s16  ;;  %s50_s21 = sadd.s32 1, %s815_s14 }
   0xc   : > { %p43_p0 = scmp.ge.s32.totalorder %s41_s20, 4  ;;  %p57_p1 = scmp.ne.s32.totalorder %s815_s14, %s811_s13 }
   0xd   : > { %p58_p2 = scmp.eq.s32.totalorder %s827_s17, 0  ;;  %p63_p3 = scmp.ne.s32.totalorder %s811_s13, %s807_s12 }
   0xe   : > { %s1047_s20 = smov (%p43_p0, %s41_s20), 0  ;;  %p64_p5 = scmp.eq.s32.totalorder %s883_s18, 0 }
   0xf   : > { %1030 = sst [smem:[#allocation16_spill]] %s1047_s20  ;;  %p895_p4 = por %p58_p2, %p57_p1 }
  0x10   : > { %s45_s23 = ssub.s32 %s823_s16, %s1047_s20  ;;  %p145_p6 = scmp.eq.s32.totalorder %s883_s18, 3 }
  0x11   : > { %p48_p7 = scmp.eq.s32.totalorder %s45_s23, 0  ;;  %p903_p8 = por %p64_p5, %p63_p3 }
  0x12   : > { %p907_p9 = por %p145_p6, %p57_p1  ;;  %p151_p10 = scmp.eq.s32.totalorder %s547_s19, 3 }
  0x13   : > { %s912_s26 = scalar_select %p48_p7, %s815_s14, %s50_s21  }
  0x14   : > { %p914_p11 = por %p151_p10, %p63_p3  ;;  %p589_p12 = scmp.lt.s32.totalorder %s827_s17, 4 }
  0x15   : > { %1034 = sst [smem:[#allocation17_spill]] %s912_s26  ;;  %s171_s28 = sand.u32 1, %s815_s14  }
  0x16   : > { %s191_s29 = sand.u32 1, %s827_s17   ;;  %s552_s30 = sshll.u32 %s171_s28, 2 }
  0x17   : > { %p923_p13 = pnand %p589_p12, %p895_p4  ;;  %s553_s5 = sshll.u32 %s823_s16, 2 }
  0x18   : > { %s1037_s1 = sld [smem:[#allocation18_spill]]  ;;  %s195_s10 = scalar_lea.vmem [#allocation9], %s552_s30 }
  0x19   : > { %s204_s11 = sshll.u32 %s195_s10, 4  ;;  %s192_s19 = scalar_lea.sflag [#allocation10], %s191_s29  ;;  %s205_s11 = int_to_ptr.vmem [resolvable:$true] %s204_s11 }
  0x1a   : > { %s220_s23 = scalar_lea.hbm %s1026_s2, %s553_s5  ;;  %p556_p0 = scmp.ge.s32.totalorder %s827_s17, 1 }
  0x1b   : > { %p229_p1 = scmp.lt.s32.totalorder %s827_s17, 5  ;;  %s550_s6 = sshll.u32 %s171_s28, 3 }
  0x1c   : > { %s551_s7 = sshll.u32 %s823_s16, 3  ;;  %s175_s26 = scalar_lea.vmem [#allocation6], %s550_s6 }
  0x1d   : > { %p938_p2 = pnand %p556_p0, %p229_p1  ;;  %s215_s21 = scalar_lea.vmem [#allocation11], %s552_s30 }
  0x1e   : > { %s200_s8 = scalar_lea.hbm %s1037_s1, %s553_s5  ;;  %s180_s1 = scalar_lea.hbm %s1024_s0, %s551_s7 }
  0x1f   : > { %s202_s9 = sshll.u32 %s200_s8, 4  ;;  %s182_s29 = sshll.u32 %s180_s1, 4  ;;  %s203_s9 = int_to_ptr.hbm [resolvable:$true] %s202_s9  ;;  %s183_s29 = int_to_ptr.hbm [resolvable:$true] %s182_s29 }
  0x20   : > { %581 = dma.hbm_to_vmem [thread:$0]  (!%p923_p13), %s203_s9, 64, %s205_s11, %s192_s19  }
  0x21   : > { %s184_s9 = sshll.u32 %s175_s26, 4  ;;  %s172_s11 = scalar_lea.sflag [#allocation7], %s171_s28  ;;  %s185_s9 = int_to_ptr.vmem [resolvable:$true] %s184_s9 }
  0x22   : > { %578 = dma.hbm_to_vmem [thread:$0]  (!%p923_p13), %s183_s29, 128, %s185_s9, %s172_s11  }
  0x23   : > { %s222_s5 = sshll.u32 %s220_s23, 4  ;;  %s224_s22 = sshll.u32 %s215_s21, 4  ;;  %s223_s5 = int_to_ptr.hbm [resolvable:$true] %s222_s5  ;;  %s225_s22 = int_to_ptr.vmem [resolvable:$true] %s224_s22 }
  0x24   : > { %584 = dma.hbm_to_vmem [thread:$0]  (!%p923_p13), %s223_s5, 64, %s225_s22, %s192_s19  }
  0x25   : > { %233 = sbr.rel (%p938_p2) target bundleno = 664 (0x298), region = 32  ;;  %s953_s1 = sand.u32 (!%p938_p2), 1, %s811_s13  }
  0x26   : > { %s557_s26 = sshll.u32 (!%p938_p2), %s953_s1, 3  ;;  %s236_s28 = scalar_lea.sflag (!%p938_p2), [#allocation7], %s953_s1 }
  0x27   : > { %s239_s23 = scalar_lea.vmem (!%p938_p2), [#allocation6], %s557_s26 }
  0x2a   : > { %794 = dma.done.wait (%p903_p8), %s236_s28, 128  }
  0x2b   : > { %796 = vsyncadd (%p903_p8), %s236_s28, 4294967168  ;;  %s245_s20 = sand.u32 1, %s883_s18   ;;  %s558_s30 = sshll.u32 %s953_s1, 2 }
  0x2c   : > { %s246_s4 = scalar_lea.sflag [#allocation10], %s245_s20  ;;  %s249_s19 = scalar_lea.vmem [#allocation9], %s558_s30 }
  0x2d   : > { %798 = dma.done.wait (%p903_p8), %s246_s4, 128  }
  0x2e   : > { %800 = vsyncadd (%p903_p8), %s246_s4, 4294967168  ;;  %vm301_vm0 = vcmask 261120   ;;  %v829_v0 = vmov 0.0   ;;  %v309_v1 = vld [vmem:[%s249_s19] sm:$0xf]  ;;  %v303_v2 = vld [vmem:[%s239_s23] sm:$0xff] }
  0x2f   : > { %302 = vst.msk [vmem:[#allocation4] sm:$0xff] %vm301_vm0, %v829_v0  ;;  %v315_v3 = vsel %vm301_vm0, %v309_v1, 0  ;;  %v304_v4 = vmul.f32 0.25503486, %v303_v2  ;;  %vm306_vm1 = vcmask 257024   ;;  %vm298_vm2 = vcmask 7168  }
  0x30   : > { %324 = vmatpush.bf16.xpose.msra.mxu0 %v315_v3  ;;  %v830_v7 = vmov -inf   ;;  %300 = vst.msk [vmem:[#allocation3] sm:$0xff] %vm298_vm2, %v829_v0  ;;  %vm331_vm3 = vcmask 64512   ;;  %v831_v11 = vmov 0   ;;  %s259_s18 = scalar_lea.vmem [#allocation11], %s558_s30  ;;  %vm365_vm4 = vcmask 1043456  }
  0x31   : > { %v305_v5 = vpack.c.bf16 %v304_v4, %v304_v4  ;;  %299 = vst.msk [vmem:[#allocation2] sm:$0xff] %vm298_vm2, %v830_v7  ;;  %642 = vset.pattern.permute.xlu0 %v831_v11  ;;  %643 = vset.pattern.permute.xlu1 %v831_v11  ;;  %v361_v16 = vld [vmem:[%s259_s18] sm:$0xf]  ;;  %s564_s24 = sshll.u32 %s819_s15, 3  ;;  %s292_s10 = scalar_lea.vmem [#allocation12], %s557_s26 }
  0x32   : > { %644 = vset.pattern.permute.xlu2 %v831_v11  ;;  %v367_v17 = vsel %vm365_vm4, %v361_v16, 0  ;;  %s413_s8 = scalar_lea.hbm %s1027_s3, %s564_s24  ;;  %s415_s29 = sshll.u32 %s292_s10, 4  ;;  %s416_s29 = int_to_ptr.vmem [resolvable:$true] %s415_s29 }
  0x33   : > { %307 = vst.msk [vmem:[#allocation5] sm:$0xf] %vm306_vm1, %v305_v5  ;;  %376 = vmatpush.bf16.msra.mxu1 %v367_v17  ;;  %s417_s9 = sshll.u32 %s413_s8, 4  ;;  %s402_s11 = scalar_lea.sflag [#allocation8], %s953_s1  ;;  %s418_s9 = int_to_ptr.hbm [resolvable:$true] %s417_s9 }
  0x34   : > { %s755_s5 = sshra.s32 %s418_s9, 4  ;;  %s761_s26 = scalar_lea.hbm %s1027_s3, 32  ;;  %s756_s5 = int_to_ptr.hbm [resolvable:$true] %s755_s5 }
  0x35   : > { %s757_s15 = scalar_lea.hbm %s756_s5, 8  ;;  %p762_p6 = scmp.lt.s32.totalorder %s756_s5, %s1027_s3 }
  0x36   : > { %v353_v34 = vld [vmem:[#allocation4] sm:$0xff]  ;;  %p758_p3 = scmp.ne.s32.totalorder %s756_s5, %s757_s15  ;;  %p763_p7 = scmp.lt.s32.totalorder %s761_s26, %s757_s15 }
  0x37   : > { %v345_v24 = vld [vmem:[#allocation3] sm:$0xff] }
  0x38   : > { %v330_v12 = vld [vmem:[#allocation2] sm:$0xff]  ;;  %p759_p4 = pnand %p758_p3, %p907_p9  ;;  %p764_p8 = por %p763_p7, %p762_p6 }
  0x3a   : > { %v308_v6 = vld [vmem:[#allocation5] sm:$0xf]  ;;  %p760_p5 = pneg %p759_p4 }
  0x3b   : > { %561 = vmatmul.msk.bf16.vlgmr.msra.gmra.mxu0 %vm301_vm0, %v308_v6 }
  0x3c   : > { %p765_p10 = pnand %p764_p8, %p760_p5 }
  0xb8   : > { %v326_v8 = vpop.f32.mrf.mxu0 }
  0xb9   : > { %v332_v9 = vsel %vm331_vm3, %v326_v8, -inf }
  0xba   : > { %333 = vmax.xlane.f32.xlu0 %v332_v9 }
  0xc0   : > { %v328_v10 = vpop.f32.mrf.mxu0 }
 0x12d   : > { %v334_v13 = vpop.xlane.xlu0 %333 }
 0x12e   : > { %v335_v14 = vmax.f32 %v330_v12, %v334_v13 }
 0x130   : > { %v336_v15 = vsub.f32 %v330_v12, %v335_v14  ;;  %384 = vst.msk [vmem:[#allocation2] sm:$0xff] %vm298_vm2, %v335_v14  ;;  %340 = vperm.xlu0 %642, %v335_v14  }
 0x1a2   : > { %v341_v18 = vpop.permute.xlu0 %340 }
 0x1a3   : > { %v343_v19 = vsub.f32 %v326_v8, %v341_v18 }
 0x1a5   : > { %645 = vpow2.f32 %v343_v19 }
 0x1a6   : > { %647 = vpow2.f32 %v336_v15 }
 0x1ab   : > { %v646_v20 = vpop.eup %645 }
 0x1ac   : > { %v347_v21 = vsel %vm331_vm3, %v646_v20, 0.0  ;;  %v360_v22 = vpack.c.bf16 %v646_v20, %v646_v20  ;;  %v648_v23 = vpop.eup %647 }
 0x1ad   : > { %348 = vadd.xlane.f32.xlu1 %v347_v21  ;;  %v346_v25 = vmul.f32 %v648_v23, %v345_v24 }
 0x1ae   : > { %562 = vmatmul.msk.bf16.vlgmr.msra.gmra.mxu1 %vm331_vm3, %v360_v22 }
 0x1c6   : > { %356 = vperm.xlu1 %643, %v648_v23  }
 0x220   : > { %v349_v26 = vpop.xlane.xlu1 %348 }
 0x221   : > { %v350_v27 = vadd.f32 %v349_v26, %v346_v25 }
 0x223   : > { %352 = vst.msk [vmem:[#allocation3] sm:$0xff] %vm298_vm2, %v350_v27 }
 0x22a   : > { %v388_v28 = vld [vmem:[#allocation3] sm:$0xff] }
 0x22b   : > { %v378_v29 = vpop.f32.mrf.mxu1  ;;  %649 = vrcp.f32 %v388_v28 }
 0x231   : > { %v650_v30 = vpop.eup %649 }
 0x232   : > { %v390_v31 = vmul.f32 %v650_v30, %v388_v28 }
 0x233   : > { %v380_v32 = vpop.f32.mrf.mxu1 }
 0x234   : > { %v391_v33 = vsub.f32 2.0, %v390_v31 }
 0x236   : > { %v392_v35 = vmul.f32 %v650_v30, %v391_v33 }
 0x238   : > { %v357_v36 = vpop.permute.xlu1 %356  ;;  %396 = vperm.xlu2 %644, %v392_v35  }
 0x239   : > { %v359_v37 = vmul.f32 %v357_v36, %v353_v34 }
 0x23b   : > { %v382_v38 = vadd.f32 %v378_v29, %v359_v37 }
 0x23d   : > { %383 = vst.msk [vmem:[#allocation4] sm:$0xff] %vm301_vm0, %v382_v38 }
 0x244   : > { %v393_v39 = vld [vmem:[#allocation4] sm:$0xff] }
 0x292   : > { %v397_v40 = vpop.permute.xlu2 %396 }
 0x293   : > { %v399_v41 = vmul.f32 %v397_v40, %v393_v39 }
 0x295   : > { %400 = vst.msk [vmem:[%s292_s10] sm:$0xff] %vm301_vm0, %v399_v41 }
 0x296   : > { %768 = shalt.err (!%p765_p10)
}
 0x297   : > { %573 = dma.vmem_to_hbm [thread:$0]  (%p907_p9), %s416_s29, 128, %s418_s9, %s402_s11  }
 0x298 PF: > { %p590_p12 = scmp.ge.s32.totalorder %s827_s17, 2  ;;  %s429_s1 = sand.u32 1, %s807_s12  }
 0x299   : > { %s430_s20 = scalar_lea.sflag [#allocation8], %s429_s1 }
 0x29a   : > { %p586_p13 = pnand %p590_p12, %p914_p11 }
 0x29c   : > { %p587_p0 = pneg %p586_p13 }
 0x29e   : > { %802 = dma.done.wait (%p587_p0), %s430_s20, 128  }
 0x29f   : > { %804 = vsyncadd (%p587_p0), %s430_s20, 4294967168  ;;  %s22_s17 = sadd.s32 1, %s827_s17   ;;  %s1039_s30 = sld [smem:[#allocation17_spill]] }
 0x2a0   : > { %p19_p1 = scmp.ge.s32.totalorder %s22_s17, 6   ;;  %s1040_s25 = sld [smem:[#allocation16_spill]] }
 0x2a1   : > { %s1041_s12 = smov %s811_s13  ;;  %s1042_s13 = smov %s815_s14 }
 0x2a2   : > { %s1044_s15 = smov %s823_s16  ;;  %21 = sbr.rel (!%p19_p1) target bundleno = 10 (0xa), region = 109 }
 0x2a5   : > { %s1043_s14 = smov %s1039_s30 }
 0x2a6   : > { %s1045_s16 = smov %s1040_s25 }
 0x2a7   :  { %436 = vsyncpa [#allocation7], 1 }
 0x2a8   :  { %438 = vsyncpa [#allocation7 + $0x1], 1 }
 0x2a9   :  { %439 = vsyncpa [#allocation10], 1 }
 0x2aa   :  { %441 = vsyncpa [#allocation10 + $0x1], 1 }
 0x2ab   :  { %442 = vsyncpa [#allocation8], 1 }
 0x2ac   :  { %444 = vsyncpa [#allocation8 + $0x1], 1 }

</bundles_post_ra>
